<compile_context>
chip_gen: v7x
topology: tpu7x:2x2x1
jax: 0.10.0
libtpu: 0.0.40
codegen_flags: <defaults>
</compile_context>

<pallas_src>
import functools

import jax
import jax.numpy as jnp
from jax.experimental import pallas as pl
from jax.experimental.pallas import tpu as pltpu


def _round_up(x: int, m: int) -> int:
    return (x + m - 1) // m * m


def _mlp_lifter_kernel(x_ref, w1_ref, b1_ref, w2_ref, b2_ref, o_ref):
    # x_ref : (TB, D)   input dtype (cast to operand dtype below)
    # w1_ref: (D, Hp)   b1_ref: (1, Hp)   operand dtype / f32
    # w2_ref: (Hp, H)   b2_ref: (1, H)    operand dtype / f32
    # o_ref : (TB, H)   out dtype
    x = x_ref[...].astype(w1_ref.dtype)                       # in-kernel cast (no HBM pass)
    h = jnp.dot(x, w1_ref[...], preferred_element_type=jnp.float32)
    h = jnp.maximum(h + b1_ref[...], 0.0)                     # f32 bias add + ReLU
    h = h.astype(w2_ref.dtype)                                # back to operand dtype for MXU
    y = jnp.dot(h, w2_ref[...], preferred_element_type=jnp.float32) + b2_ref[...]
    o_ref[...] = y.astype(o_ref.dtype)


@functools.partial(
    jax.jit,
    static_argnames=("num_feat_vec", "block_b", "compute_dtype", "out_dtype"))
def feat3d_lifter(in_feat, w1, b1, w2, b2, *, num_feat_vec,
                  block_b=512, compute_dtype=jnp.bfloat16, out_dtype=jnp.float32):
    """Pallas implementation of Feat3dLifter.forward.

    in_feat: (B, in_feat_dim)
    w1: (D, H), b1: (H,), w2: (H, H), b2: (H,)   with H = 3*num_feat_vec
    returns: (B, 3, num_feat_vec) in out_dtype
    """
    B, D = in_feat.shape
    H = num_feat_vec * 3
    assert w1.shape == (D, H) and w2.shape == (H, H)
    assert b1.shape == (H,) and b2.shape == (H,)

    Hp = _round_up(H, 128)                       # hidden (VMEM-internal) dim, lane padded
    x_sz = jnp.dtype(in_feat.dtype).itemsize
    w_sz = jnp.dtype(compute_dtype).itemsize
    o_sz = jnp.dtype(out_dtype).itemsize

    # --- batch tile -----------------------------------------------------------
    # Multiple of 32 (clean sublane packing for f32/bf16/int8), or the whole
    # batch as a single full-dim block when B is smaller than one tile (a
    # full-extent block is always legal regardless of alignment).
    TB = _round_up(block_b, 32)
    if TB >= B:
        TB = B

    # --- VMEM budget: double-buffered x/out tiles + (double-buffered) weights --
    weights_bytes = 2 * ((D * Hp + Hp * H) * w_sz + (Hp + H) * 4)

    def _vmem_need(tb):
        return 2 * tb * (D * x_sz + H * o_sz) + weights_bytes

    VMEM_CAP = 48 * 1024 * 1024                  # leaves headroom on v7x's 64 MiB/TC
    while TB > 64 and _vmem_need(TB) > VMEM_CAP - (4 << 20):
        TB = max(64, _round_up(TB // 2, 32))     # auto-shrink tile to fit
    vmem_limit = int(min(max(_vmem_need(TB) + (4 << 20), 32 * 1024 * 1024), VMEM_CAP))

    grid = (pl.cdiv(B, TB),)

    # --- only the tiny weights are padded (hidden dim) / cast on host ---------
    w1_p = jnp.pad(w1, ((0, 0), (0, Hp - H))).astype(compute_dtype)
    b1_p = jnp.pad(b1, (0, Hp - H)).reshape(1, Hp).astype(jnp.float32)
    w2_p = jnp.pad(w2, ((0, Hp - H), (0, 0))).astype(compute_dtype)
    b2_p = b2.reshape(1, H).astype(jnp.float32)

    cost = pl.CostEstimate(
        flops=2 * B * (D * Hp + Hp * H),
        transcendentals=0,
        bytes_accessed=(B * D * x_sz + B * H * o_sz
                        + (D * Hp + Hp * H) * w_sz + (Hp + H) * 4),
    )

    out2d = pl.pallas_call(
        _mlp_lifter_kernel,
        out_shape=jax.ShapeDtypeStruct((B, H), out_dtype),
        grid=grid,
        in_specs=[
            pl.BlockSpec((TB, D), lambda i: (i, 0)),   # x: batch-tiled, unpadded, native dtype
            pl.BlockSpec((D, Hp), lambda i: (0, 0)),   # W1: VMEM-resident
            pl.BlockSpec((1, Hp), lambda i: (0, 0)),   # b1: resident
            pl.BlockSpec((Hp, H), lambda i: (0, 0)),   # W2: resident
            pl.BlockSpec((1, H), lambda i: (0, 0)),    # b2: resident
        ],
        out_specs=pl.BlockSpec((TB, H), lambda i: (i, 0)),
        compiler_params=pltpu.CompilerParams(
            dimension_semantics=("parallel",),          # batch axis -> both TCs on v7x
            vmem_limit_bytes=vmem_limit,
        ),
        cost_estimate=cost,
    )(in_feat, w1_p, b1_p, w2_p, b2_p)

    # Same row-major reshape as torch .reshape(-1, 3, num_feat_vec); no slicing.
    return out2d.reshape(B, 3, num_feat_vec)


def _reference(in_feat, w1, b1, w2, b2, num_feat_vec):
    h = jnp.maximum(in_feat @ w1 + b1, 0.0)
    y = h @ w2 + b2
    return y.reshape(-1, 3, num_feat_vec)


if __name__ == "__main__":
    key = jax.random.PRNGKey(0)

    def make_params(k, in_dim, hidden):
        k_w1, k_b1, k_w2, k_b2 = jax.random.split(k, 4)
        s1 = 1.0 / jnp.sqrt(in_dim)
        s2 = 1.0 / jnp.sqrt(hidden)
        w1 = jax.random.uniform(k_w1, (in_dim, hidden), jnp.float32, -s1, s1)
        b1 = jax.random.uniform(k_b1, (hidden,), jnp.float32, -s1, s1)
        w2 = jax.random.uniform(k_w2, (hidden, hidden), jnp.float32, -s2, s2)
        b2 = jax.random.uniform(k_b2, (hidden,), jnp.float32, -s2, s2)
        return w1, b1, w2, b2

    # Small shapes consistent with the module (in_feat_dim -> 3*num_feat_vec MLP).
    batch, in_feat_dim, num_feat_vec = 8, 32, 8
    hidden = num_feat_vec * 3
    k_x, k_p, key = jax.random.split(key, 3)
    x = jax.random.normal(k_x, (batch, in_feat_dim), dtype=jnp.float32)
    w1, b1, w2, b2 = make_params(k_p, in_feat_dim, hidden)
    ref = _reference(x, w1, b1, w2, b2, num_feat_vec)

    # --- check 1: f32 operands, single (full) batch block --------------------
    out_f32 = jax.block_until_ready(
        feat3d_lifter(x, w1, b1, w2, b2, num_feat_vec=num_feat_vec,
                      compute_dtype=jnp.float32))
    assert out_f32.shape == (batch, 3, num_feat_vec), out_f32.shape
    assert jnp.allclose(out_f32, ref, atol=1e-5, rtol=1e-5), "f32 small-batch mismatch"

    # --- check 2: default bf16-operand / f32-accumulate path -----------------
    out_bf = jax.block_until_ready(
        feat3d_lifter(x, w1, b1, w2, b2, num_feat_vec=num_feat_vec))
    assert jnp.allclose(out_bf, ref, atol=3e-2, rtol=3e-2), "bf16 small-batch mismatch"

    # --- check 3: multi-step grid with a partial trailing block --------------
    batch2 = 48                       # TB=32 -> 2 grid steps, last block has 16 valid rows
    k_x2, key = jax.random.split(key)
    x2 = jax.random.normal(k_x2, (batch2, in_feat_dim), dtype=jnp.float32)
    ref2 = _reference(x2, w1, b1, w2, b2, num_feat_vec)

    out2 = jax.block_until_ready(
        feat3d_lifter(x2, w1, b1, w2, b2, num_feat_vec=num_feat_vec,
                      block_b=32, compute_dtype=jnp.float32))
    assert out2.shape == (batch2, 3, num_feat_vec), out2.shape
    assert jnp.allclose(out2, ref2, atol=1e-5, rtol=1e-5), "f32 tiled-batch mismatch"

    out2_bf = jax.block_until_ready(
        feat3d_lifter(x2, w1, b1, w2, b2, num_feat_vec=num_feat_vec, block_b=32))
    assert jnp.allclose(out2_bf, ref2, atol=3e-2, rtol=3e-2), "bf16 tiled-batch mismatch"

    print("KERNEL_OK")
</pallas_src>

<mosaic_0001>
module attributes {stable_mosaic.version = 11 : i64} {
  func.func @_mlp_lifter_kernel(%arg0: i32, %arg1: memref<8x32xf32, #tpu.memory_space<vmem>>, %arg2: memref<32x128xf32, #tpu.memory_space<vmem>>, %arg3: memref<1x128xf32, #tpu.memory_space<vmem>>, %arg4: memref<128x24xf32, #tpu.memory_space<vmem>>, %arg5: memref<1x24xf32, #tpu.memory_space<vmem>>, %arg6: memref<8x24xf32, #tpu.memory_space<vmem>>) attributes {dimension_semantics = [#tpu.dimension_semantics<parallel>], iteration_bounds = array<i64: 1>, scalar_prefetch = 0 : i64, scratch_operands = 0 : i64, tpu.core_type = #tpu.core_type<tc>, window_params = [{transform_indices = @transform_0, window_bounds = array<i64: 8, 32>}, {pipeline_mode = #tpu.pipeline_mode<synchronous>, transform_indices = @transform_1, window_bounds = array<i64: 32, 128>}, {pipeline_mode = #tpu.pipeline_mode<synchronous>, transform_indices = @transform_2, window_bounds = array<i64: 1, 128>}, {pipeline_mode = #tpu.pipeline_mode<synchronous>, transform_indices = @transform_3, window_bounds = array<i64: 128, 24>}, {pipeline_mode = #tpu.pipeline_mode<synchronous>, transform_indices = @transform_4, window_bounds = array<i64: 1, 24>}, {transform_indices = @transform_5, window_bounds = array<i64: 8, 24>}]} {
    %c0 = arith.constant 0 : index
    %c0_0 = arith.constant 0 : index
    %0 = vector.load %arg1[%c0, %c0_0] : memref<8x32xf32, #tpu.memory_space<vmem>>, vector<8x32xf32>
    %c0_1 = arith.constant 0 : index
    %c0_2 = arith.constant 0 : index
    %1 = vector.load %arg2[%c0_1, %c0_2] : memref<32x128xf32, #tpu.memory_space<vmem>>, vector<32x128xf32>
    %cst = arith.constant dense<0.000000e+00> : vector<8x128xf32>
    %2 = tpu.matmul %0, %1, %cst {dimension_numbers = #tpu.dot_dimension_numbers<[1], [0], [0], [1], [0, 0, 1, 1], [], []>} : vector<8x32xf32>, vector<32x128xf32>, vector<8x128xf32> -> vector<8x128xf32>
    %c0_3 = arith.constant 0 : index
    %c0_4 = arith.constant 0 : index
    %3 = vector.load %arg3[%c0_3, %c0_4] : memref<1x128xf32, #tpu.memory_space<vmem>>, vector<1x128xf32>
    %4 = vector.broadcast %3 : vector<1x128xf32> to vector<8x128xf32>
    %5 = arith.addf %2, %4 : vector<8x128xf32>
    %cst_5 = arith.constant 0.000000e+00 : f32
    %6 = vector.broadcast %cst_5 : f32 to vector<8x128xf32>
    %7 = arith.maximumf %5, %6 : vector<8x128xf32>
    %c0_6 = arith.constant 0 : index
    %c0_7 = arith.constant 0 : index
    %8 = vector.load %arg4[%c0_6, %c0_7] : memref<128x24xf32, #tpu.memory_space<vmem>>, vector<128x24xf32>
    %cst_8 = arith.constant dense<0.000000e+00> : vector<8x24xf32>
    %9 = tpu.matmul %7, %8, %cst_8 {dimension_numbers = #tpu.dot_dimension_numbers<[1], [0], [0], [1], [0, 0, 1, 1], [], []>} : vector<8x128xf32>, vector<128x24xf32>, vector<8x24xf32> -> vector<8x24xf32>
    %c0_9 = arith.constant 0 : index
    %c0_10 = arith.constant 0 : index
    %10 = vector.load %arg5[%c0_9, %c0_10] : memref<1x24xf32, #tpu.memory_space<vmem>>, vector<1x24xf32>
    %11 = vector.broadcast %10 : vector<1x24xf32> to vector<8x24xf32>
    %12 = arith.addf %9, %11 : vector<8x24xf32>
    %c0_11 = arith.constant 0 : index
    %c0_12 = arith.constant 0 : index
    %13 = vector.load %arg6[%c0_11, %c0_12] : memref<8x24xf32, #tpu.memory_space<vmem>>, vector<8x24xf32>
    tpu.vector_store %arg6[%c0_11, %c0_12], %12 {strides = array<i32>} : memref<8x24xf32, #tpu.memory_space<vmem>>, vector<8x24xf32>,
    return
  }
  func.func @transform_0(%arg0: i32) -> (i32, i32) {
    %c0_i32 = arith.constant 0 : i32
    %c0_i32_0 = arith.constant 0 : i32
    return %arg0, %c0_i32 : i32, i32
  }
  func.func @transform_1(%arg0: i32) -> (i32, i32) {
    %c0_i32 = arith.constant 0 : i32
    %c0_i32_0 = arith.constant 0 : i32
    %c0_i32_1 = arith.constant 0 : i32
    return %c0_i32, %c0_i32_0 : i32, i32
  }
  func.func @transform_2(%arg0: i32) -> (i32, i32) {
    %c0_i32 = arith.constant 0 : i32
    %c0_i32_0 = arith.constant 0 : i32
    %c0_i32_1 = arith.constant 0 : i32
    return %c0_i32, %c0_i32_0 : i32, i32
  }
  func.func @transform_3(%arg0: i32) -> (i32, i32) {
    %c0_i32 = arith.constant 0 : i32
    %c0_i32_0 = arith.constant 0 : i32
    %c0_i32_1 = arith.constant 0 : i32
    return %c0_i32, %c0_i32_0 : i32, i32
  }
  func.func @transform_4(%arg0: i32) -> (i32, i32) {
    %c0_i32 = arith.constant 0 : i32
    %c0_i32_0 = arith.constant 0 : i32
    %c0_i32_1 = arith.constant 0 : i32
    return %c0_i32, %c0_i32_0 : i32, i32
  }
  func.func @transform_5(%arg0: i32) -> (i32, i32) {
    %c0_i32 = arith.constant 0 : i32
    %c0_i32_0 = arith.constant 0 : i32
    return %arg0, %c0_i32 : i32, i32
  }
}

</mosaic_0001>

<bundles_post_ra>
// kernel: feat3d_lifter.1
= control target key start
LH: loop header
LB: loop body
LE: loop exit
PB: predicated region body
PF: predicated region fallthrough
CT: control target
= control target key end

     0   :  { %v310_v0 = vmov 0.0|0.0   ;;  %vm311_vm0 = vmmov 0   ;;  %v312_v4 = vmov 0.0   ;;  %vm32_vm1 = vcmask 261120   ;;  %s415_s1 = inlined_call_operand.vmem [shape: f32[32,128], index: 1, kind: input, shape index: {}]   ;;  %s416_s3 = inlined_call_operand.vmem [shape: f32[128,24], index: 3, kind: input, shape index: {}]   ;;  %s417_s0 = inlined_call_operand.vmem [shape: f32[8,32], index: 0, kind: input, shape index: {}]   ;;  %s418_s2 = inlined_call_operand.vmem [shape: f32[1,128], index: 2, kind: input, shape index: {}]   ;;  %s419_s4 = inlined_call_operand.vmem [shape: f32[1,24], index: 4, kind: input, shape index: {}]   ;;  %s420_s5 = inlined_call_operand.vmem [shape: f32[8,24], index: 5, kind: output, shape index: {}]  }
   0x1   :  { %277 = vmatprep.subr.bf16.mxu0 %v310_v0  ;;  %v21_v1 = vld [vmem:[%s415_s1] sm:$0xff]  ;;  %v22_v2 = vld [vmem:[%s415_s1 + $0x8] sm:$0xff]  ;;  %v23_v3 = vld [vmem:[%s415_s1 + $0x10] sm:$0xff]  ;;  %239 = vmatprep.mubr.msk.f32.mxu0 %vm311_vm0, %v312_v4  ;;  %vm200_vm2 = vcmask 195584  }
   0x2   :  { %v278_v5 = vpack.c.bf16 %v22_v2, %v21_v1  ;;  %v24_v6 = vld [vmem:[%s415_s1 + $0x18] sm:$0xff]  ;;  %283 = vmatprep.subr.bf16.mxu1 %v310_v0  ;;  %v107_v7 = vld [vmem:[%s416_s3] sm:$0xff]  ;;  %274 = vmatprep.mubr.msk.f32.mxu1 %vm311_vm0, %v312_v4  ;;  %v108_v8 = vld [vmem:[%s416_s3 + $0x8] sm:$0xff] }
   0x3   :  { %v109_v9 = vld [vmem:[%s416_s3 + $0x10] sm:$0xff]  ;;  %v110_v10 = vld [vmem:[%s416_s3 + $0x18] sm:$0xff]  ;;  %v281_v11 = vpack.c.bf16 %v24_v6, %v23_v3  ;;  %v284_v12 = vpack.c.bf16 %v108_v8, %v107_v7  ;;  %v111_v14 = vld [vmem:[%s416_s3 + $0x20] sm:$0xff] }
   0x4   :  { %279 = vmatpush3.bf16.msra.mxu0 %v278_v5  ;;  %v287_v13 = vpack.c.bf16 %v110_v10, %v109_v9  ;;  %v112_v15 = vld [vmem:[%s416_s3 + $0x28] sm:$0xff]  ;;  %v20_v16 = vld [vmem:[%s417_s0] sm:$0xff]  ;;  %v113_v18 = vld [vmem:[%s416_s3 + $0x30] sm:$0xff] }
   0x5   :  { %280 = vmatprep.subr.bf16.mxu0 %v310_v0  ;;  %285 = vmatpush3.bf16.msra.mxu1 %v284_v12  ;;  %v290_v17 = vpack.c.bf16 %v112_v15, %v111_v14  ;;  %v114_v19 = vld [vmem:[%s416_s3 + $0x38] sm:$0xff]  ;;  %v115_v21 = vld [vmem:[%s416_s3 + $0x40] sm:$0xff]  ;;  %v116_v22 = vld [vmem:[%s416_s3 + $0x48] sm:$0xff] }
   0x6   :  { %286 = vmatprep.subr.bf16.mxu1 %v310_v0  ;;  %v293_v20 = vpack.c.bf16 %v114_v19, %v113_v18  ;;  %v296_v23 = vpack.c.bf16 %v116_v22, %v115_v21  ;;  %v117_v24 = vld [vmem:[%s416_s3 + $0x50] sm:$0xff]  ;;  %v118_v25 = vld [vmem:[%s416_s3 + $0x58] sm:$0xff]  ;;  %v119_v27 = vld [vmem:[%s416_s3 + $0x60] sm:$0xff] }
   0x7   :  { %v299_v26 = vpack.c.bf16 %v118_v25, %v117_v24  ;;  %v120_v28 = vld [vmem:[%s416_s3 + $0x68] sm:$0xff]  ;;  %v121_v30 = vld [vmem:[%s416_s3 + $0x70] sm:$0xff]  ;;  %v122_v31 = vld [vmem:[%s416_s3 + $0x78] sm:$0xff] }
   0x8   :  { %282 = vmatpush3.bf16.msra.mxu0 %v281_v11  ;;  %v302_v29 = vpack.c.bf16 %v120_v28, %v119_v27  ;;  %v305_v32 = vpack.c.bf16 %v122_v31, %v121_v30  ;;  %v206_v33 = vld [vmem:[%s418_s2] ss:$0 sm:$0xff] }
   0x9   :  { %288 = vmatpush3.bf16.msra.mxu1 %v287_v13  ;;  %v208_v38 = vld [vmem:[%s419_s4] ss:$0 sm:$0xff] }
   0xa   :  { %289 = vmatprep.subr.bf16.mxu1 %v310_v0 }
   0xb   :  { %240 = vmatmul.mubr.msk.f32.vlgmr.msra.gmra.mrb[0].mxu0 %vm32_vm1, %v20_v16 }
   0xd   :  { %291 = vmatpush3.bf16.msra.mxu1 %v290_v17 }
   0xe   :  { %292 = vmatprep.subr.bf16.mxu1 %v310_v0 }
  0x11   :  { %294 = vmatpush3.bf16.msra.mxu1 %v293_v20 }
  0x12   :  { %295 = vmatprep.subr.bf16.mxu1 %v310_v0 }
  0x15   :  { %297 = vmatpush3.bf16.msra.mxu1 %v296_v23 }
  0x16   :  { %298 = vmatprep.subr.bf16.mxu1 %v310_v0 }
  0x19   :  { %300 = vmatpush3.bf16.msra.mxu1 %v299_v26 }
  0x1a   :  { %301 = vmatprep.subr.bf16.mxu1 %v310_v0 }
  0x1d   :  { %303 = vmatpush3.bf16.msra.mxu1 %v302_v29 }
  0x1e   :  { %304 = vmatprep.subr.bf16.mxu1 %v310_v0 }
  0x21   :  { %306 = vmatpush3.bf16.msra.mxu1 %v305_v32 }
  0xde   :  { %v102_v34 = vpop.f32.mrb[0].mxu0 }
  0xdf   :  { %v103_v35 = vadd.f32 %v206_v33, %v102_v34  ;;  %v241_v36 = vpop.f32.mrb[1].mxu0 }
  0xe1   :  { %v106_v37 = vmax.f32 %v103_v35, 0.0 }
  0xe3   :  { %275 = vmatmul.mubr.f32.vlgmr.msra.gmra.mrb[0].mxu1 %v106_v37 }
 0x1b6   :  { %v196_v39 = vpop.f32.mrb[0].mxu1 }
 0x1b7   :  { %v197_v40 = vadd.f32 %v208_v38, %v196_v39  ;;  %v276_v41 = vpop.f32.mrb[1].mxu1 }
 0x1b9   :  { %201 = vst.msk [vmem:[%s420_s5] sm:$0xff] %vm200_vm2, %v197_v40 }

</bundles_post_ra>
